<compile_context>
chip_gen: v5e
topology: v5e:2x2
jax: 0.10.0
libtpu: 0.0.40
codegen_flags: <defaults>
</compile_context>

<pallas_src>
import jax
import jax.numpy as jnp
from jax.experimental import pallas as pl
from jax.experimental.pallas import tpu as pltpu


def _view_max_kernel(x_ref, w_ref, b_ref, aux_ref, pooled_ref, acc_ref):
    """One (batch-tile, view, spatial-chunk) grid step.

    x_ref:      (tb, C, S_chunk)  current view's spatial chunk (V/D squeezed)
    w_ref:      (C, F_pad)        backbone weight, pre-scaled by 1/(H*W)
    b_ref:      (1, F_pad)        backbone bias
    aux_ref:    (tb, F_pad)       this view's 128-aligned column block of aux
    pooled_ref: (tb, F_pad)       running max over views (resident over v, si)
    acc_ref:    (tb, C)           f32 spatial partial sum (resident over si)
    """
    v = pl.program_id(1)
    si = pl.program_id(2)
    last_si = pl.num_programs(2) - 1

    # f32-accumulating spatial sum of this chunk (no full-precision copy of
    # the slab; the 1/HW scale is folded into the weight).
    part = jnp.sum(x_ref[...], axis=-1, dtype=jnp.float32)        # (tb, C)

    @pl.when(si == 0)
    def _():
        acc_ref[...] = part

    @pl.when(si > 0)
    def _():
        acc_ref[...] = acc_ref[...] + part

    @pl.when(si == last_si)
    def _():
        # Linear C -> F_pad on the MXU, bias, ReLU.
        feat = jnp.dot(acc_ref[...], w_ref[...],
                       preferred_element_type=jnp.float32)
        feat = jnp.maximum(feat + b_ref[...], 0.0)                # (tb, F_pad)

        # Per-view feature written straight into its final (B, V*F_pad) slot:
        # F_pad % 128 == 0 -> unmasked lane-dense stores, no wrapper transpose.
        aux_ref[...] = feat.astype(aux_ref.dtype)

        # Max over views accumulated directly in the resident output block.
        # feat is post-ReLU (>= 0), so view 0 can be written directly.
        @pl.when(v == 0)
        def _():
            pooled_ref[...] = feat.astype(pooled_ref.dtype)

        @pl.when(v > 0)
        def _():
            pooled_ref[...] = jnp.maximum(pooled_ref[...],
                                          feat.astype(pooled_ref.dtype))


def _round_up(x, m):
    return ((x + m - 1) // m) * m


def _vmem_capacity_bytes():
    try:
        return int(pltpu.get_tpu_info().vmem_capacity_bytes)
    except Exception:
        return 64 * 1024 * 1024        # conservative: v7x per-TensorCore VMEM


def _batch_tile_candidates(B):
    """Output blocks are (tb, F_pad): tb must be a multiple of 8 or equal B.
    Prefer tb in [8, 64]; cap at B//2 when B >= 16 so the parallel grid axis
    has >= 2 steps (v7x megacore sharding)."""
    if B <= 8 or B % 8 != 0:
        return [B]
    cap = B // 2 if B >= 16 else B
    cands = [c for c in (64, 32, 16, 8) if c <= cap and B % c == 0]
    return cands if cands else [B]


def view_max_aggregate(mvimages, w, b, *, vmem_fraction=0.45,
                       force_spatial_chunk=None):
    """ViewMaxAggregate.forward with a GAP -> Linear(C->F) -> ReLU backbone.

    Returns (pooled.squeeze(), aux) like the PyTorch module (lifting_net is an
    empty nn.Sequential, i.e. identity)."""
    has_depth = False
    depth_idx = 0
    if mvimages.ndim == 6:
        B, V, C, D, H, W = mvimages.shape
        has_depth = True
        depth_idx = D // 2
        # Free reshape (merges contiguous trailing dims); the D//2 plane is
        # selected by the BlockSpec, so no HBM copy of the sliced tensor.
        x = mvimages.reshape(B, V, C, D, H * W)
    elif mvimages.ndim == 5:
        B, V, C, H, W = mvimages.shape
        x = mvimages.reshape(B, V, C, H * W)          # free: contiguous merge
    elif mvimages.ndim == 4:
        # TODO(synk): the PyTorch module unsqueezes dim 0 here (ending up with a
        # single backbone call); we use the sensible (B,C,H,W) -> V=1 reading.
        B, C, H, W = mvimages.shape
        V = 1
        x = mvimages.reshape(B, 1, C, H * W)
    else:
        raise ValueError(f"Unexpected input shape: {mvimages.shape}")

    F = w.shape[1]
    HW = H * W
    F_pad = _round_up(F, 128)                         # lane-dense output stores
    out_dtype = jnp.result_type(mvimages.dtype, w.dtype)

    itemsize = jnp.dtype(x.dtype).itemsize
    sub = max(8, 32 // itemsize)                      # sublane multiple (dtype)

    # 1/(H*W) folded into the weight so the kernel only needs a sum.
    w_p = jnp.pad(w.astype(jnp.float32) * (1.0 / HW), ((0, 0), (0, F_pad - F)))
    b_p = jnp.pad(b.astype(jnp.float32), (0, F_pad - F)).reshape(1, F_pad)

    # ---- VMEM budgeting (tile-padded footprints, per-generation capacity) ---
    capacity = _vmem_capacity_bytes()
    budget = int(vmem_fraction * capacity)
    slack = 2 << 20

    # Weight + bias are double-buffered by the pipeline even though their block
    # index is constant.
    # TODO(synk): pipeline_mode=pl.Buffered(1) on the params would halve this.
    param_bytes = 2 * (_round_up(C, 8) + 8) * F_pad * 4

    def fixed_bytes(tb):
        out_bytes = 2 * 2 * _round_up(tb, 8) * F_pad * 4     # aux + pooled blocks
        acc_bytes = _round_up(tb, 8) * _round_up(C, 128) * 4
        return param_bytes + out_bytes + acc_bytes + slack

    def per_col_bytes(tb):                            # one padded spatial column
        return tb * _round_up(C, sub) * itemsize

    align = 128                                       # spatial (lane) alignment
    S = HW

    # VMEM-aware batch tile: largest preferred tb whose minimal double-buffered
    # input slab still fits the budget.
    cands = _batch_tile_candidates(B)
    tb = cands[-1]
    for cand in cands:
        if fixed_bytes(cand) + 2 * per_col_bytes(cand) * align <= budget:
            tb = cand
            break

    # Spatial chunk: biggest 128-multiple divisor of HW whose double-buffered
    # slab fits; full extent when HW is small or cannot be chunked cleanly.
    per_buf = max((budget - fixed_bytes(tb)) // 2, per_col_bytes(tb) * align)
    if force_spatial_chunk is not None and (
            force_spatial_chunk == S or
            (force_spatial_chunk % align == 0 and S % force_spatial_chunk == 0)):
        chunk = force_spatial_chunk
    elif _round_up(S, align) * per_col_bytes(tb) <= per_buf:
        chunk = S
    elif S % align != 0:
        chunk = S   # TODO(synk): pad HW in the wrapper to allow clean chunking
    else:
        max_units = max(int(per_buf // (per_col_bytes(tb) * align)), 1)
        chunk = align
        for units in range(max_units, 0, -1):
            if S % (units * align) == 0:
                chunk = units * align
                break
    n_chunks = S // chunk

    slab_bytes = per_col_bytes(tb) * _round_up(chunk, align)
    vmem_need = fixed_bytes(tb) + 2 * slab_bytes
    vmem_limit = max(int(vmem_need * 1.25) + (2 << 20), 32 << 20)
    vmem_limit = int(min(vmem_limit, capacity - (12 << 20)))

    # ---- grid & specs -------------------------------------------------------
    grid = (B // tb, V, n_chunks)

    if has_depth:
        x_spec = pl.BlockSpec(
            (tb, None, C, None, chunk),
            lambda bi, v, si: (bi, v, 0, depth_idx, si))
    else:
        x_spec = pl.BlockSpec(
            (tb, None, C, chunk),
            lambda bi, v, si: (bi, v, 0, si))

    grid_spec = pltpu.PrefetchScalarGridSpec(
        num_scalar_prefetch=0,
        grid=grid,
        in_specs=[
            x_spec,
            pl.BlockSpec((C, F_pad), lambda bi, v, si: (0, 0)),   # weight
            pl.BlockSpec((1, F_pad), lambda bi, v, si: (0, 0)),   # bias
        ],
        out_specs=[
            # aux in its final (B, V*F_pad) layout: one 128-aligned column
            # block per view -> unmasked stores, no wrapper transpose.
            pl.BlockSpec((tb, F_pad), lambda bi, v, si: (bi, v)),
            # pooled: constant over (v, si) -> VMEM-resident max accumulator.
            pl.BlockSpec((tb, F_pad), lambda bi, v, si: (bi, 0)),
        ],
        scratch_shapes=[pltpu.VMEM((tb, C), jnp.float32)],
    )

    aux_flat, pooled_pad = pl.pallas_call(
        _view_max_kernel,
        out_shape=(
            jax.ShapeDtypeStruct((B, V * F_pad), out_dtype),
            jax.ShapeDtypeStruct((B, F_pad), out_dtype),
        ),
        grid_spec=grid_spec,
        compiler_params=pltpu.CompilerParams(
            dimension_semantics=("parallel", "arbitrary", "arbitrary"),
            vmem_limit_bytes=int(vmem_limit),
        ),
    )(x, w_p, b_p)

    aux = aux_flat.reshape(B, V, F_pad)      # free: contiguous split of last dim
    pooled = pooled_pad
    if F_pad != F:
        aux = aux[:, :, :F]
        pooled = pooled[:, :F]

    pooled_view = pooled.reshape(B, -1)      # torch .view(B, -1)
    return jnp.squeeze(pooled_view), aux     # (.squeeze(), aux)


if __name__ == "__main__":
    key = jax.random.PRNGKey(0)
    B, V, C, H, W, F = 2, 3, 4, 16, 16, 32
    k1, k2, k3, k4 = jax.random.split(key, 4)

    mvimages = jax.random.normal(k1, (B, V, C, H, W), dtype=jnp.float32)
    # deterministic synthetic backbone params (GAP -> linear C->F -> ReLU)
    w = 0.1 * jax.random.normal(k2, (C, F), dtype=jnp.float32)
    b = 0.01 * jax.random.normal(k3, (F,), dtype=jnp.float32)

    def reference(views5d):
        gap = jnp.mean(views5d.reshape(B, V, C, -1), axis=-1)            # (B,V,C)
        feat = jnp.maximum(jnp.einsum("bvc,cf->bvf", gap, w) + b, 0.0)   # (B,V,F)
        return jnp.max(feat, axis=1), feat

    ref_pooled, ref_aux = reference(mvimages)

    # 1) 5D path, single spatial chunk
    pooled, aux = view_max_aggregate(mvimages, w, b)
    jax.block_until_ready((pooled, aux))
    assert pooled.shape == (B, F) and aux.shape == (B, V, F)
    assert jnp.allclose(pooled, ref_pooled, atol=1e-5, rtol=1e-5)
    assert jnp.allclose(aux, ref_aux, atol=1e-5, rtol=1e-5)

    # 2) 5D path with forced spatial chunking (exercises the partial-sum axis)
    pooled_c, aux_c = view_max_aggregate(mvimages, w, b, force_spatial_chunk=128)
    jax.block_until_ready((pooled_c, aux_c))
    assert jnp.allclose(pooled_c, ref_pooled, atol=1e-5, rtol=1e-5)
    assert jnp.allclose(aux_c, ref_aux, atol=1e-5, rtol=1e-5)

    # 3) 6D path: D//2 depth plane selected inside the BlockSpec (no HBM copy)
    Dd = 6
    mv6 = jax.random.normal(k4, (B, V, C, Dd, H, W), dtype=jnp.float32)
    pooled6, aux6 = view_max_aggregate(mv6, w, b)
    jax.block_until_ready((pooled6, aux6))
    ref_pooled6, ref_aux6 = reference(mv6[:, :, :, Dd // 2])
    assert pooled6.shape == (B, F) and aux6.shape == (B, V, F)
    assert jnp.allclose(pooled6, ref_pooled6, atol=1e-5, rtol=1e-5)
    assert jnp.allclose(aux6, ref_aux6, atol=1e-5, rtol=1e-5)

    print("KERNEL_OK")
</pallas_src>

<mosaic_0001>
module attributes {stable_mosaic.version = 11 : i64} {
  func.func @_view_max_kernel(%arg0: i32, %arg1: i32, %arg2: i32, %arg3: memref<2x1x4x256xf32, #tpu.memory_space<vmem>>, %arg4: memref<4x128xf32, #tpu.memory_space<vmem>>, %arg5: memref<1x128xf32, #tpu.memory_space<vmem>>, %arg6: memref<2x128xf32, #tpu.memory_space<vmem>>, %arg7: memref<2x128xf32, #tpu.memory_space<vmem>>, %arg8: memref<2x4xf32, #tpu.memory_space<vmem>>) attributes {dimension_semantics = [#tpu.dimension_semantics<parallel>, #tpu.dimension_semantics<arbitrary>, #tpu.dimension_semantics<arbitrary>], iteration_bounds = array<i64: 1, 3, 1>, scalar_prefetch = 0 : i64, scratch_operands = 1 : i64, tpu.core_type = #tpu.core_type<tc>, window_params = [{transform_indices = @transform_0, window_bounds = array<i64: 2, 1, 4, 256>}, {pipeline_mode = #tpu.pipeline_mode<synchronous>, transform_indices = @transform_1, window_bounds = array<i64: 4, 128>}, {pipeline_mode = #tpu.pipeline_mode<synchronous>, transform_indices = @transform_2, window_bounds = array<i64: 1, 128>}, {transform_indices = @transform_3, window_bounds = array<i64: 2, 128>}, {transform_indices = @transform_4, window_bounds = array<i64: 2, 128>}]} {
    %c0 = arith.constant 0 : index
    %c0_0 = arith.constant 0 : index
    %c0_1 = arith.constant 0 : index
    %c0_2 = arith.constant 0 : index
    %0 = vector.load %arg3[%c0, %c0_0, %c0_1, %c0_2] : memref<2x1x4x256xf32, #tpu.memory_space<vmem>>, vector<2x1x4x256xf32>
    %1 = vector.shape_cast %0 : vector<2x1x4x256xf32> to vector<2x4x256xf32>
    %cst = arith.constant dense<0.000000e+00> : vector<2x4xf32>
    %2 = vector.multi_reduction <add>, %1, %cst [2] : vector<2x4x256xf32> to vector<2x4xf32>
    %c0_i32 = arith.constant 0 : i32
    %3 = arith.cmpi eq, %arg2, %c0_i32 : i32
    %4 = arith.extui %3 : i1 to i32
    %c0_i32_3 = arith.constant 0 : i32
    %5 = arith.cmpi ne, %4, %c0_i32_3 : i32
    scf.if %5 {
      %c0_8 = arith.constant 0 : index
      %c0_9 = arith.constant 0 : index
      %12 = vector.load %arg8[%c0_8, %c0_9] : memref<2x4xf32, #tpu.memory_space<vmem>>, vector<2x4xf32>
      tpu.vector_store %arg8[%c0_8, %c0_9], %2 {strides = array<i32>} : memref<2x4xf32, #tpu.memory_space<vmem>>, vector<2x4xf32>,
    } else {
    }
    %c0_i32_4 = arith.constant 0 : i32
    %6 = arith.cmpi sgt, %arg2, %c0_i32_4 : i32
    %7 = arith.extui %6 : i1 to i32
    %c0_i32_5 = arith.constant 0 : i32
    %8 = arith.cmpi ne, %7, %c0_i32_5 : i32
    scf.if %8 {
      %c0_8 = arith.constant 0 : index
      %c0_9 = arith.constant 0 : index
      %12 = vector.load %arg8[%c0_8, %c0_9] : memref<2x4xf32, #tpu.memory_space<vmem>>, vector<2x4xf32>
      %13 = arith.addf %12, %2 : vector<2x4xf32>
      %c0_10 = arith.constant 0 : index
      %c0_11 = arith.constant 0 : index
      %14 = vector.load %arg8[%c0_10, %c0_11] : memref<2x4xf32, #tpu.memory_space<vmem>>, vector<2x4xf32>
      tpu.vector_store %arg8[%c0_10, %c0_11], %13 {strides = array<i32>} : memref<2x4xf32, #tpu.memory_space<vmem>>, vector<2x4xf32>,
    } else {
    }
    %c0_i32_6 = arith.constant 0 : i32
    %9 = arith.cmpi eq, %arg2, %c0_i32_6 : i32
    %10 = arith.extui %9 : i1 to i32
    %c0_i32_7 = arith.constant 0 : i32
    %11 = arith.cmpi ne, %10, %c0_i32_7 : i32
    scf.if %11 {
      %c0_8 = arith.constant 0 : index
      %c0_9 = arith.constant 0 : index
      %12 = vector.load %arg8[%c0_8, %c0_9] : memref<2x4xf32, #tpu.memory_space<vmem>>, vector<2x4xf32>
      %c0_10 = arith.constant 0 : index
      %c0_11 = arith.constant 0 : index
      %13 = vector.load %arg4[%c0_10, %c0_11] : memref<4x128xf32, #tpu.memory_space<vmem>>, vector<4x128xf32>
      %cst_12 = arith.constant dense<0.000000e+00> : vector<2x128xf32>
      %14 = tpu.matmul %12, %13, %cst_12 {dimension_numbers = #tpu.dot_dimension_numbers<[1], [0], [0], [1], [0, 0, 1, 1], [], []>} : vector<2x4xf32>, vector<4x128xf32>, vector<2x128xf32> -> vector<2x128xf32>
      %c0_13 = arith.constant 0 : index
      %c0_14 = arith.constant 0 : index
      %15 = vector.load %arg5[%c0_13, %c0_14] : memref<1x128xf32, #tpu.memory_space<vmem>>, vector<1x128xf32>
      %16 = vector.broadcast %15 : vector<1x128xf32> to vector<2x128xf32>
      %17 = arith.addf %14, %16 : vector<2x128xf32>
      %cst_15 = arith.constant 0.000000e+00 : f32
      %18 = vector.broadcast %cst_15 : f32 to vector<2x128xf32>
      %19 = arith.maximumf %17, %18 : vector<2x128xf32>
      %c0_16 = arith.constant 0 : index
      %c0_17 = arith.constant 0 : index
      %20 = vector.load %arg6[%c0_16, %c0_17] : memref<2x128xf32, #tpu.memory_space<vmem>>, vector<2x128xf32>
      tpu.vector_store %arg6[%c0_16, %c0_17], %19 {strides = array<i32>} : memref<2x128xf32, #tpu.memory_space<vmem>>, vector<2x128xf32>,
      %c0_i32_18 = arith.constant 0 : i32
      %21 = arith.cmpi eq, %arg1, %c0_i32_18 : i32
      %22 = arith.extui %21 : i1 to i32
      %c0_i32_19 = arith.constant 0 : i32
      %23 = arith.cmpi ne, %22, %c0_i32_19 : i32
      scf.if %23 {
        %c0_22 = arith.constant 0 : index
        %c0_23 = arith.constant 0 : index
        %27 = vector.load %arg7[%c0_22, %c0_23] : memref<2x128xf32, #tpu.memory_space<vmem>>, vector<2x128xf32>
        tpu.vector_store %arg7[%c0_22, %c0_23], %19 {strides = array<i32>} : memref<2x128xf32, #tpu.memory_space<vmem>>, vector<2x128xf32>,
      } else {
      }
      %c0_i32_20 = arith.constant 0 : i32
      %24 = arith.cmpi sgt, %arg1, %c0_i32_20 : i32
      %25 = arith.extui %24 : i1 to i32
      %c0_i32_21 = arith.constant 0 : i32
      %26 = arith.cmpi ne, %25, %c0_i32_21 : i32
      scf.if %26 {
        %c0_22 = arith.constant 0 : index
        %c0_23 = arith.constant 0 : index
        %27 = vector.load %arg7[%c0_22, %c0_23] : memref<2x128xf32, #tpu.memory_space<vmem>>, vector<2x128xf32>
        %28 = arith.maximumf %27, %19 : vector<2x128xf32>
        %c0_24 = arith.constant 0 : index
        %c0_25 = arith.constant 0 : index
        %29 = vector.load %arg7[%c0_24, %c0_25] : memref<2x128xf32, #tpu.memory_space<vmem>>, vector<2x128xf32>
        tpu.vector_store %arg7[%c0_24, %c0_25], %28 {strides = array<i32>} : memref<2x128xf32, #tpu.memory_space<vmem>>, vector<2x128xf32>,
      } else {
      }
    } else {
    }
    return
  }
  func.func @transform_0(%arg0: i32, %arg1: i32, %arg2: i32) -> (i32, i32, i32, i32) {
    %c0_i32 = arith.constant 0 : i32
    %c0_i32_0 = arith.constant 0 : i32
    return %arg0, %arg1, %c0_i32, %arg2 : i32, i32, i32, i32
  }
  func.func @transform_1(%arg0: i32, %arg1: i32, %arg2: i32) -> (i32, i32) {
    %c0_i32 = arith.constant 0 : i32
    %c0_i32_0 = arith.constant 0 : i32
    %c0_i32_1 = arith.constant 0 : i32
    return %c0_i32, %c0_i32_0 : i32, i32
  }
  func.func @transform_2(%arg0: i32, %arg1: i32, %arg2: i32) -> (i32, i32) {
    %c0_i32 = arith.constant 0 : i32
    %c0_i32_0 = arith.constant 0 : i32
    %c0_i32_1 = arith.constant 0 : i32
    return %c0_i32, %c0_i32_0 : i32, i32
  }
  func.func @transform_3(%arg0: i32, %arg1: i32, %arg2: i32) -> (i32, i32) {
    %c0_i32 = arith.constant 0 : i32
    return %arg0, %arg1 : i32, i32
  }
  func.func @transform_4(%arg0: i32, %arg1: i32, %arg2: i32) -> (i32, i32) {
    %c0_i32 = arith.constant 0 : i32
    %c0_i32_0 = arith.constant 0 : i32
    return %arg0, %c0_i32 : i32, i32
  }
}

</mosaic_0001>

<bundles_post_ra>
// kernel: tpu_custom_call.1
= control target key start
LH: loop header
LB: loop body
LE: loop exit
PB: predicated region body
PF: predicated region fallthrough
CT: control target
= control target key end

     0   :  { %s1008_s0 = inlined_call_operand.hbm [shape: f32[2,3,4,256], index: 0, kind: input, shape index: {}]   ;;  %s1009_s1 = inlined_call_operand.hbm [shape: f32[4,128], index: 1, kind: input, shape index: {}]   ;;  %s1010_s2 = inlined_call_operand.vmem [shape: f32[1,128], index: 2, kind: input, shape index: {}]   ;;  %s1011_s3 = inlined_call_operand.hbm [shape: f32[2,384], index: 3, kind: output, shape index: {0}]   ;;  %s1012_s4 = inlined_call_operand.hbm [shape: f32[2,128], index: 4, kind: output, shape index: {1}]  }
   0x1   :  { %1017 = sst [smem:[#allocation18_spill]] %s1009_s1 }
   0x2   :  { %10 = vsyncpa [#allocation4], 0 }
   0x3   :  { %12 = vsyncpa [#allocation4 + $0x1], 0 }
   0x4   :  { %13 = vsyncpa [#allocation7], 0 }
   0x5   :  { %14 = vsyncpa [#allocation5], 0 }
   0x6   :  { %16 = vsyncpa [#allocation5 + $0x1], 0 }
   0x7   :  { %17 = vsyncpa [#allocation10], 0  ;;  %s838_s15 = smov 0   ;;  %s840_s16 = smov 0  }
   0x8   :  { %s842_s17 = smov 0   ;;  %s844_s18 = smov 0  }
   0x9   :  { %s846_s19 = smov 0   ;;  %s848_s20 = smov 0  }
   0xa LB: > { %1018 = sst [smem:[#allocation15_spill]] %s786_s15  ;;  %s521_s21 = sadd.s32 4294967295, %s806_s20   ;;  %s806_s20 = sphi %s848_s20, %s23_s20   ;;  %s802_s19 = sphi %s846_s19, %s1037_s19   ;;  %s798_s18 = sphi %s844_s18, %s1036_s18   ;;  %s794_s17 = sphi %s842_s17, %s1035_s17   ;;  %s790_s16 = sphi %s840_s16, %s1034_s16   ;;  %s786_s15 = sphi %s838_s15, %s1033_s15  }
   0xb   : > { %1019 = sst [smem:[#allocation16_spill]] %s806_s20  ;;  %s522_s22 = sadd.s32 4294967294, %s806_s20  }
   0xc   : > { %s53_s23 = sadd.s32 1, %s794_s17  ;;  %p60_p0 = scmp.ne.s32.totalorder %s794_s17, %s790_s16 }
   0xd   : > { %p61_p1 = scmp.eq.s32.totalorder %s806_s20, 0  ;;  %p66_p2 = scmp.ne.s32.totalorder %s790_s16, %s786_s15 }
   0xe   : > { %p876_p3 = scmp.eq.s32.totalorder %s521_s21, 0  ;;  %p880_p4 = scmp.eq.s32.totalorder %s521_s21, 2 }
   0xf   : > { %p884_p5 = por %p61_p1, %p60_p0  ;;  %p140_p6 = scmp.eq.s32.totalorder %s522_s22, 2 }
  0x10   : > { %p890_p7 = por %p876_p3, %p66_p2  ;;  %p896_p8 = por %p880_p4, %p60_p0 }
  0x11   : > { %p900_p9 = por %p140_p6, %p66_p2  ;;  %p523_p10 = scmp.ge.s32.totalorder %s806_s20, 1 }
  0x12   : > { %p173_p11 = scmp.lt.s32.totalorder %s806_s20, 4  ;;  %s1027_s1 = sld [smem:[#allocation18_spill]] }
  0x13   : > { %s1025_s29 = scalar_select %p900_p9, 1, 0 }
  0x14   : > { %p909_p12 = pnand %p523_p10, %p173_p11  ;;  %s808_s8 = smov [#allocation6]  }
  0x15   : > { %1026 = sst [smem:[#allocation17_spill]] %s1025_s29  ;;  %s187_s9 = sshll.u32 %s808_s8, 4  ;;  %s188_s9 = int_to_ptr.vmem [resolvable:$true] %s187_s9 }
  0x16   : > { %p556_p13 = pneg %p909_p12  ;;  %p569_p0 = scmp.lt.s32.totalorder %s806_s20, 3 }
  0x17   : > { %s38_s11 = sadd.s32 1, %s802_s19  ;;  %s201_s12 = sand.u32 1, %s794_s17  }
  0x18   : > { %s185_s6 = sshll.u32 %s1027_s1, 4  ;;  %p557_p1 = pnand %p556_p13, %p876_p3  ;;  %s186_s6 = int_to_ptr.hbm [resolvable:$true] %s185_s6 }
  0x19   : > { %p920_p2 = pnand %p569_p0, %p884_p5  ;;  %p40_p6 = scmp.ge.s32.totalorder %s38_s11, 3 }
  0x1a   : > { %559 = dma.hbm_to_vmem [thread:$0]  (!%p557_p1), %s186_s6, 64, %s188_s9, [#allocation7]  }
  0x1b   : > { %s1039_s11 = smov (%p40_p6, %s38_s11), 0  ;;  %s526_s13 = sshll.u32 %s201_s12, 4 }
  0x1c   : > { %s47_s14 = ssub.s32 %s802_s19, %s1039_s11  ;;  %s543_s21 = sshll.u32 %s802_s19, 3 }
  0x1d   : > { %p51_p10 = scmp.eq.s32.totalorder %s47_s14, 0  ;;  %s215_s26 = scalar_lea.hbm %s1008_s0, %s543_s21 }
  0x1e   : > { %s205_s5 = scalar_lea.vmem [#allocation3], %s526_s13  ;;  %s216_s29 = sshll.u32 %s215_s26, 4  ;;  %s217_s29 = int_to_ptr.hbm [resolvable:$true] %s216_s29 }
  0x1f   : > { %s218_s8 = sshll.u32 %s205_s5, 4  ;;  %s202_s6 = scalar_lea.sflag [#allocation4], %s201_s12  ;;  %s219_s8 = int_to_ptr.vmem [resolvable:$true] %s218_s8 }
  0x20   : > { %s937_s1 = scalar_select %p51_p10, %s794_s17, %s53_s23  }
  0x21   : > { %s809_s9 = smov 384   ;;  %s810_s15 = smov 128  }
  0x22   : > { %s811_s20 = smov 8   ;;  %230 = sbr.rel (%p909_p12) target bundleno = 352 (0x160), region = 32 }
  0x23   : > { %563 = dma.hbm_to_vmem [thread:$0]  (!%p920_p2), %s217_s29, 256, %s219_s8, %s202_s6, %s809_s9, %s810_s15, %s811_s20  }
  0x24   : > { %s944_s14 = sand.u32 (!%p909_p12), 1, %s790_s16  }
  0x25   : > { %s530_s23 = sshll.u32 (!%p909_p12), %s944_s14, 4  ;;  %s233_s13 = scalar_lea.sflag (!%p909_p12), [#allocation4], %s944_s14 }
  0x26   : > { %s236_s21 = scalar_lea.vmem (!%p909_p12), [#allocation3], %s530_s23 }
  0x27   : > { %769 = dma.done.wait (%p890_p7), %s233_s13, 256  }
  0x28   : > { %771 = vsyncadd (%p890_p7), %s233_s13, 4294967040 }
  0x29   : > { %773 = dma.done.wait (%p876_p3), [#allocation7], 64  }
  0x2a   : > { %775 = vsyncadd (%p876_p3), [#allocation7], 4294967232  ;;  %v269_v0 = vld [vmem:[%s236_s21] sm:$0xff]  ;;  %v270_v1 = vld [vmem:[%s236_s21 + $0x8] sm:$0xff]  ;;  %vm284_vm0 = vcmask 1043456   ;;  %v301_v14 = vlaneseq  ;;  %vm305_vm1 = vcmask 1041409  }
  0x2b   : > { %273 = vst [vmem:[#allocation1] ss:$2 sm:$0xff] %v269_v0  ;;  %v331_v12 = vld [vmem:[#allocation6] sm:$0xf]  ;;  %vm308_vm2 = vcmask 25600   ;;  %vm336_vm3 = vcmask 31744  }
  0x2c   : > { %277 = vst [vmem:[#allocation1 + $0x10] ss:$2 sm:$0xff] %v270_v1  ;;  %533 = vmatpush.msk.msra.mxu0 %vm284_vm0, %v331_v12  ;;  %v302_v15 = vand.u32 127, %v301_v14  ;;  %v627_v21 = vld [vmem:[%s1010_s2] ss:$0 sm:$0xff]  ;;  %s532_s24 = sshll.u32 %s944_s14, 1 }
  0x2d   : > { %s264_s27 = scalar_lea.vmem [#allocation8], %s532_s24  ;;  %p535_p3 = scmp.ne.s32.totalorder %s798_s18, 0 }
  0x32   : > { %v274_v2 = vld.sshfl [vmem:[#allocation1] sm:$0xff pattern:$0x75316420]  ;;  %v275_v3 = vld.sshfl [vmem:[#allocation1 + $0x8] sm:$0xff pattern:$0x75316420] }
  0x33   : > { %v285_v4 = vsel %vm284_vm0, %v274_v2, 0.0  ;;  %v286_v5 = vsel %vm284_vm0, %v275_v3, 0.0  ;;  %v278_v7 = vld.sshfl [vmem:[#allocation1 + $0x10] sm:$0xff pattern:$0x75316420] }
  0x34   : > { %v287_v6 = vadd.f32 %v286_v5, %v285_v4  ;;  %v279_v8 = vld.sshfl [vmem:[#allocation1 + $0x18] sm:$0xff pattern:$0x75316420]  ;;  %v290_v9 = vsel %vm284_vm0, %v278_v7, 0.0 }
  0x35   : > { %v291_v10 = vsel %vm284_vm0, %v279_v8, 0.0 }
  0x36   : > { %288 = vadd.xlane.f32.xlu0 %v287_v6  ;;  %v292_v11 = vadd.f32 %v291_v10, %v290_v9 }
  0x3e   : > { %293 = vadd.xlane.f32.xlu0 %v292_v11 }
  0xa9   : > { %v289_v13 = vpop.xlane.xlu0 %288 }
  0xaa   : > { %v303_v17 = vperm.slane %v289_v13, %v302_v15 }
  0xb1   : > { %v294_v16 = vpop.xlane.xlu0 %293 }
  0xb2   : > { %v304_v18 = vperm.slane %v294_v16, %v302_v15 }
  0xb4   : > { %v306_v19 = vsel %vm305_vm1, %v304_v18, %v303_v17 }
  0xb5   : > { %309 = vst.msk [vmem:[#allocation2] sm:$0x3] %vm308_vm2, %v306_v19 }
  0xbc   : > { %v330_v20 = vld [vmem:[#allocation2] sm:$0x3] }
  0xbd   : > { %534 = vmatmul.msk.f32.vlgmr.msra.gmra.mxu0 %vm336_vm3, %v330_v20 }
 0x13a   : > { %v360_v22 = vpop.f32.mrf.mxu0 }
 0x13b   : > { %v361_v23 = vadd.f32 %v627_v21, %v360_v22  ;;  %368 = sbr.rel (%p535_p3) target bundleno = 321 (0x141), region = 56 }
 0x13d   : > { %v363_v24 = vmax.f32 %v361_v23, 0.0 }
 0x13f   : > { %364 = vst [vmem:[%s264_s27] sm:$0x3] %v363_v24 }
 0x140   : > { %369 = vst [vmem:[#allocation9] sm:$0x3] %v363_v24 }
 0x141 PF: > { %p536_p5 = scmp.le.s32.totalorder %s798_s18, 0 }
 0x143   : > { %373 = sbr.rel (%p536_p5) target bundleno = 332 (0x14c), region = 60 }
 0x148   : > { %v374_v25 = vld [vmem:[#allocation9] sm:$0x3] }
 0x149   : > { %v375_v26 = vmax.f32 %v374_v25, %v363_v24 }
 0x14b   : > { %376 = vst [vmem:[#allocation9] sm:$0x3] %v375_v26 }
 0x14c PF: > { %s538_s29 = sshll.u32 %s798_s18, 1  ;;  %s392_s22 = sshll.u32 %s264_s27, 4  ;;  %s393_s22 = int_to_ptr.vmem [resolvable:$true] %s392_s22 }
 0x14d   : > { %s390_s12 = scalar_lea.hbm %s1011_s3, %s538_s29  ;;  %s378_s26 = scalar_lea.sflag [#allocation5], %s944_s14 }
 0x14e   : > { %s394_s30 = sshll.u32 %s390_s12, 4  ;;  %s708_s18 = scalar_lea.hbm %s1011_s3, 6  ;;  %s395_s30 = int_to_ptr.hbm [resolvable:$true] %s394_s30 }
 0x14f   : > { %s702_s5 = sshra.s32 %s395_s30, 4  ;;  %s703_s5 = int_to_ptr.hbm [resolvable:$true] %s702_s5 }
 0x150   : > { %s704_s8 = scalar_lea.hbm %s703_s5, 2  ;;  %p709_p13 = scmp.lt.s32.totalorder %s703_s5, %s1011_s3 }
 0x151   : > { %p705_p7 = scmp.ne.s32.totalorder %s703_s5, %s704_s8  ;;  %p710_p0 = scmp.lt.s32.totalorder %s708_s18, %s704_s8 }
 0x153   : > { %p706_p11 = pnand %p705_p7, %p896_p8  ;;  %p711_p1 = por %p710_p0, %p709_p13 }
 0x155   : > { %p707_p12 = pneg %p706_p11 }
 0x157   : > { %p712_p2 = pnand %p711_p1, %p707_p12 }
 0x159   : > { %715 = shalt.err (!%p712_p2)
}
 0x15a   : > { %550 = dma.vmem_to_hbm [thread:$0]  (%p896_p8), %s393_s22, 32, %s395_s30, %s378_s26  }
 0x15b   : > { %s408_s15 = sshll.u32 %s1012_s4, 4  ;;  %s812_s20 = smov [#allocation9]   ;;  %s409_s15 = int_to_ptr.hbm [resolvable:$true] %s408_s15 }
 0x15c   : > { %s406_s24 = sshll.u32 %s812_s20, 4  ;;  %s407_s24 = int_to_ptr.vmem [resolvable:$true] %s406_s24 }
 0x15d   : > { %552 = dma.vmem_to_hbm [thread:$0]  (%p880_p4), %s407_s24, 32, %s409_s15, [#allocation10]  }
 0x15e   : > { %777 = dma.done.wait (%p880_p4), [#allocation10], 32  }
 0x15f   : > { %779 = vsyncadd (%p880_p4), [#allocation10], 4294967264 }
 0x160 PF: > { %s1030_s28 = sld [smem:[#allocation16_spill]] }
 0x161   : > { %s1031_s27 = sld [smem:[#allocation15_spill]] }
 0x166   : > { %p573_p8 = scmp.ge.s32.totalorder %s1030_s28, 2 }
 0x167   : > { %s425_s7 = sand.u32 1, %s1031_s27  }
 0x168   : > { %p565_p6 = pnand %p573_p8, %p900_p9  ;;  %s426_s10 = scalar_lea.sflag [#allocation5], %s425_s7 }
 0x16a   : > { %p566_p10 = pneg %p565_p6 }
 0x16c   : > { %781 = dma.done.wait (%p566_p10), %s426_s10, 32  }
 0x16d   : > { %783 = vsyncadd (%p566_p10), %s426_s10, 4294967264  ;;  %s23_s20 = sadd.s32 1, %s1030_s28   ;;  %s1033_s15 = smov %s790_s16 }
 0x16e   : > { %p20_p3 = scmp.ge.s32.totalorder %s23_s20, 5   ;;  %s1034_s16 = smov %s794_s17 }
 0x16f   : > { %s1035_s17 = smov %s937_s1  ;;  %s1036_s18 = smov %s802_s19 }
 0x170   : > { %s1037_s19 = smov %s1039_s11  ;;  %22 = sbr.rel (!%p20_p3) target bundleno = 10 (0xa), region = 111 }
 0x175   :  { %432 = vsyncpa [#allocation4], 1 }
 0x176   :  { %434 = vsyncpa [#allocation4 + $0x1], 1 }
 0x177   :  { %435 = vsyncpa [#allocation7], 1 }
 0x178   :  { %436 = vsyncpa [#allocation5], 1 }
 0x179   :  { %438 = vsyncpa [#allocation5 + $0x1], 1 }
 0x17a   :  { %439 = vsyncpa [#allocation10], 1 }

</bundles_post_ra>
